<compile_context>
chip_gen: v6e
topology: v6e:2x2x1
jax: 0.10.0
libtpu: 0.0.40
codegen_flags: <defaults>
</compile_context>

<pallas_src>
import jax
import jax.numpy as jnp
from jax.experimental import pallas as pl
from jax.experimental.pallas import tpu as pltpu

NEG_INF = -1e30          # pad-lane bias; exp(NEG_INF - max) underflows to 0
LN_EPS = 1e-12           # LXMERT/BERT LayerNorm eps (torch default is 1e-5)


def _round_up(n, m=128):
    return ((n + m - 1) // m) * m


# ----------------------------- Pallas kernel --------------------------------
def make_kernel(PV, PH2, PI2, PA):
    """Kernel factory closing over the (static) padded dimensions."""

    def kernel(x_ref, wv_ref, w1_ref, w2_ref, lnpool_ref, aux_ref, out_ref):
        x = x_ref[...]                          # (TB, PV + PH2) f32
        vis = x[:, :PV]                         # pooled visual feats (padded)
        text = x[:, PV:PV + PH2]                # [text_vqa | text_vg] (padded)

        aux = aux_ref[...]                      # (8, 2*PA) f32
        bv = aux[0:1, :PH2]
        b1 = aux[1:2, :PI2]
        gamma = aux[2:3, :PI2]
        beta = aux[3:4, :PI2]
        b2 = aux[4:5, :]                        # (1, 2*PA), -1e30 on pad lanes

        # Visual projection for BOTH heads in one MXU matmul (bf16 in, f32 acc)
        vis_h = jax.nn.gelu(
            jnp.dot(vis.astype(jnp.bfloat16), wv_ref[...],
                    preferred_element_type=jnp.float32) + bv,
            approximate=True)

        # Cross-modal fusion (elementwise, VPU, f32)
        fused = text * vis_h                    # (TB, PH2)

        # Answer head layer 1 (block-diagonal -> both heads in one matmul)
        h = jax.nn.gelu(
            jnp.dot(fused.astype(jnp.bfloat16), w1_ref[...],
                    preferred_element_type=jnp.float32) + b1,
            approximate=True)                   # (TB, PI2)

        # Per-head LayerNorm, one-pass stats via segmented-mean matmul (MXU):
        # lnpool broadcasts each head's mean / E[x^2] back to its own lanes.
        lnp = lnpool_ref[...]
        mean = jnp.dot(h, lnp, preferred_element_type=jnp.float32)
        ex2 = jnp.dot(h * h, lnp, preferred_element_type=jnp.float32)
        var = ex2 - mean * mean
        h_ln = (h - mean) * jax.lax.rsqrt(var + LN_EPS) * gamma + beta

        # Answer head layer 2 (block-diagonal, per-head A padded to PA lanes)
        logits = jnp.dot(h_ln.astype(jnp.bfloat16), w2_ref[...],
                         preferred_element_type=jnp.float32) + b2  # (TB, 2*PA)
        lv = logits[:, :PA]                     # vqa head (pad lanes = -1e30)
        lg = logits[:, PA:]                     # vg head  (pad lanes = -1e30)

        # confidence = max(softmax(x)) = 1 / sum(exp(x - max(x)))
        # conf_vqa > conf_vg  <=>  s_vqa < s_vg  (skip divide and second max)
        s_v = jnp.sum(jnp.exp(lv - jnp.max(lv, axis=-1, keepdims=True)),
                      axis=-1, keepdims=True)
        s_g = jnp.sum(jnp.exp(lg - jnp.max(lg, axis=-1, keepdims=True)),
                      axis=-1, keepdims=True)

        # torch.where(conf_vqa.unsqueeze(1) > conf_vg.unsqueeze(1), vqa, vg)
        out_ref[...] = jnp.where(s_v < s_g, lv, lg)

    return kernel


# ------------------------- host-side weight packing --------------------------
def pack_params(params):
    """Fuse both heads into wide / block-diagonal, lane-padded weights."""
    wv, bv = params["wv"], params["bv"]            # (2, F+4, H), (2, 1, H)
    w1, b1 = params["w1"], params["b1"]            # (2, H, I),  (2, 1, I)
    gamma, beta = params["gamma"], params["beta"]  # (2, 1, I)
    w2, b2 = params["w2"], params["b2"]            # (2, I, A),  (2, 1, A)

    F4, H = wv.shape[1], wv.shape[2]
    I, A = w2.shape[1], w2.shape[2]
    PV, PH2, PI2, PA = _round_up(F4), _round_up(2 * H), _round_up(2 * I), _round_up(A)

    # Visual projection: both heads side-by-side along the lane axis.
    wv_cat = jnp.zeros((PV, PH2), jnp.float32)
    wv_cat = wv_cat.at[:F4, :H].set(wv[0]).at[:F4, H:2 * H].set(wv[1])
    bv_cat = jnp.zeros((PH2,), jnp.float32)
    bv_cat = bv_cat.at[:H].set(bv[0, 0]).at[H:2 * H].set(bv[1, 0])

    # First answer-head linear: block-diagonal (one matmul serves both heads).
    w1_blk = jnp.zeros((PH2, PI2), jnp.float32)
    w1_blk = w1_blk.at[:H, :I].set(w1[0]).at[H:2 * H, I:2 * I].set(w1[1])
    b1_cat = jnp.zeros((PI2,), jnp.float32)
    b1_cat = b1_cat.at[:I].set(b1[0, 0]).at[I:2 * I].set(b1[1, 0])
    g_cat = jnp.zeros((PI2,), jnp.float32)
    g_cat = g_cat.at[:I].set(gamma[0, 0]).at[I:2 * I].set(gamma[1, 0])
    be_cat = jnp.zeros((PI2,), jnp.float32)
    be_cat = be_cat.at[:I].set(beta[0, 0]).at[I:2 * I].set(beta[1, 0])

    # Segmented-mean matrix for per-head LayerNorm statistics (runs on MXU).
    lnpool = jnp.zeros((PI2, PI2), jnp.float32)
    lnpool = lnpool.at[:I, :I].set(1.0 / I).at[I:2 * I, I:2 * I].set(1.0 / I)

    # Second answer-head linear: block-diagonal, each head padded to PA lanes.
    w2_blk = jnp.zeros((PI2, 2 * PA), jnp.float32)
    w2_blk = w2_blk.at[:I, :A].set(w2[0]).at[I:2 * I, PA:PA + A].set(w2[1])
    b2_cat = jnp.full((2 * PA,), NEG_INF, jnp.float32)
    b2_cat = b2_cat.at[:A].set(b2[0, 0]).at[PA:PA + A].set(b2[1, 0])

    # Pack all 1-D vectors into one lane-dense aux slab (fewer operands/DMAs).
    aux = jnp.zeros((8, 2 * PA), jnp.float32)
    aux = aux.at[0, :PH2].set(bv_cat).at[1, :PI2].set(b1_cat)
    aux = aux.at[2, :PI2].set(g_cat).at[3, :PI2].set(be_cat)
    aux = aux.at[4, :].set(b2_cat)

    return dict(
        wv=wv_cat.astype(jnp.bfloat16),
        w1=w1_blk.astype(jnp.bfloat16),
        w2=w2_blk.astype(jnp.bfloat16),
        lnpool=lnpool,
        aux=aux,
        dims=dict(F4=F4, H=H, I=I, A=A, PV=PV, PH2=PH2, PI2=PI2, PA=PA),
    )


# ------------------------------ plain-JAX glue --------------------------------
def _pool_text(word_emb, type_emb, input_ids, token_type_ids, attention_mask):
    emb = word_emb[input_ids] + type_emb[token_type_ids]           # [B,S,H]
    m = attention_mask.astype(jnp.float32)[..., None]              # [B,S,1]
    denom = jnp.maximum(jnp.sum(m, axis=1), 1.0)                   # [B,1]
    return jnp.sum(emb * m, axis=1) / denom                        # [B,H]


def _pool_visual(visual_feats, visual_pos):
    return jnp.concatenate([visual_feats, visual_pos], axis=-1).mean(axis=1)


# --------------------------------- wrapper ------------------------------------
def combined_lxmert_forward(input_ids, attention_mask, token_type_ids,
                            visual_feats, visual_pos, params):
    """Embedding/pooling glue in plain JAX, fused answer-head + confidence
    combination in a single gridded Pallas kernel."""
    B = input_ids.shape[0]
    packed = pack_params(params)
    d = packed["dims"]
    PV, PH2, PI2, PA = d["PV"], d["PH2"], d["PI2"], d["PA"]
    F4, H, A = d["F4"], d["H"], d["A"]

    tp0 = _pool_text(params["word_emb"][0], params["type_emb"][0],
                     input_ids, token_type_ids, attention_mask)
    tp1 = _pool_text(params["word_emb"][1], params["type_emb"][1],
                     input_ids, token_type_ids, attention_mask)
    vis_in = _pool_visual(visual_feats, visual_pos)                # [B, F+4]

    # Batch row-tile: multiple of 8 sublanes (128 for production batches).
    TB = 128 if B >= 128 else 8
    B_pad = pl.cdiv(B, TB) * TB

    # Pack all activations into one lane-dense, (8,128)-aligned input slab.
    x = jnp.zeros((B_pad, PV + PH2), jnp.float32)
    x = x.at[:B, :F4].set(vis_in)
    x = x.at[:B, PV:PV + H].set(tp0)
    x = x.at[:B, PV + H:PV + 2 * H].set(tp1)

    kernel = make_kernel(PV, PH2, PI2, PA)
    grid = (B_pad // TB,)

    flops = 2 * B_pad * (PV * PH2 + PH2 * PI2 + 2 * PI2 * PI2 + PI2 * 2 * PA)
    transcendentals = B_pad * (PH2 + PI2 + 2 * PA)       # gelu-tanh + exp
    bytes_accessed = (x.size * 4
                      + packed["wv"].size * 2 + packed["w1"].size * 2
                      + packed["w2"].size * 2 + packed["lnpool"].size * 4
                      + packed["aux"].size * 4 + B_pad * PA * 4)

    out = pl.pallas_call(
        kernel,
        out_shape=jax.ShapeDtypeStruct((B_pad, PA), jnp.float32),
        grid=grid,
        in_specs=[
            pl.BlockSpec((TB, PV + PH2), lambda i: (i, 0)),   # activations
            pl.BlockSpec((PV, PH2), lambda i: (0, 0)),        # wv  (bf16)
            pl.BlockSpec((PH2, PI2), lambda i: (0, 0)),       # w1  (bf16)
            pl.BlockSpec((PI2, 2 * PA), lambda i: (0, 0)),    # w2  (bf16)
            pl.BlockSpec((PI2, PI2), lambda i: (0, 0)),       # lnpool (f32)
            pl.BlockSpec((8, 2 * PA), lambda i: (0, 0)),      # aux (f32)
        ],
        out_specs=pl.BlockSpec((TB, PA), lambda i: (i, 0)),
        compiler_params=pltpu.CompilerParams(
            dimension_semantics=("parallel",)),
        cost_estimate=pl.CostEstimate(
            flops=flops, transcendentals=transcendentals,
            bytes_accessed=bytes_accessed),
    )(x, packed["wv"], packed["w1"], packed["w2"], packed["lnpool"],
      packed["aux"])

    return out[:B, :A]


# --------------------------- pure-JAX reference -------------------------------
def reference_forward(input_ids, attention_mask, token_type_ids,
                      visual_feats, visual_pos, params):
    bf = jnp.bfloat16
    vis_in = _pool_visual(visual_feats, visual_pos)

    def head(m, text_pool):
        vis_h = jax.nn.gelu(
            jnp.dot(vis_in.astype(bf), params["wv"][m].astype(bf),
                    preferred_element_type=jnp.float32) + params["bv"][m],
            approximate=True)
        fused = text_pool * vis_h
        h = jax.nn.gelu(
            jnp.dot(fused.astype(bf), params["w1"][m].astype(bf),
                    preferred_element_type=jnp.float32) + params["b1"][m],
            approximate=True)
        mu = jnp.mean(h, axis=-1, keepdims=True)
        var = jnp.mean(h * h, axis=-1, keepdims=True) - mu * mu
        h = (h - mu) * jax.lax.rsqrt(var + LN_EPS) * params["gamma"][m] \
            + params["beta"][m]
        return jnp.dot(h.astype(bf), params["w2"][m].astype(bf),
                       preferred_element_type=jnp.float32) + params["b2"][m]

    tp0 = _pool_text(params["word_emb"][0], params["type_emb"][0],
                     input_ids, token_type_ids, attention_mask)
    tp1 = _pool_text(params["word_emb"][1], params["type_emb"][1],
                     input_ids, token_type_ids, attention_mask)
    logits_vqa = head(0, tp0)
    logits_vg = head(1, tp1)
    conf_vqa = jnp.max(jax.nn.softmax(logits_vqa, axis=-1), axis=-1,
                       keepdims=True)
    conf_vg = jnp.max(jax.nn.softmax(logits_vg, axis=-1), axis=-1,
                      keepdims=True)
    return jnp.where(conf_vqa > conf_vg, logits_vqa, logits_vg)


# --------------------------- parameter construction ---------------------------
def make_params(key, *, vocab=100, n_types=2, H=32, I=64, F=16, A=16):
    ks = jax.random.split(key, 10)
    scale = 0.05
    return {
        "word_emb": scale * jax.random.normal(ks[0], (2, vocab, H), jnp.float32),
        "type_emb": scale * jax.random.normal(ks[1], (2, n_types, H), jnp.float32),
        "wv":    scale * jax.random.normal(ks[2], (2, F + 4, H), jnp.float32),
        "bv":    scale * jax.random.normal(ks[3], (2, 1, H), jnp.float32),
        "w1":    scale * jax.random.normal(ks[4], (2, H, I), jnp.float32),
        "b1":    scale * jax.random.normal(ks[5], (2, 1, I), jnp.float32),
        "gamma": jnp.ones((2, 1, I), jnp.float32),
        "beta":  jnp.zeros((2, 1, I), jnp.float32),
        "w2":    scale * jax.random.normal(ks[6], (2, I, A), jnp.float32),
        "b2":    scale * jax.random.normal(ks[7], (2, 1, A), jnp.float32),
    }


# ----------------------------------- main --------------------------------------
if __name__ == "__main__":
    B, S, V, F = 2, 8, 4, 16          # batch, seq, num visual objects, feat dim
    key = jax.random.PRNGKey(0)
    k_ids, k_tt, k_vf, k_vp, k_par = jax.random.split(key, 5)

    input_ids = jax.random.randint(k_ids, (B, S), 0, 100, dtype=jnp.int32)
    attention_mask = jnp.concatenate(
        [jnp.ones((B, S - 2), jnp.int32), jnp.zeros((B, 2), jnp.int32)], axis=1)
    token_type_ids = jax.random.randint(k_tt, (B, S), 0, 2, dtype=jnp.int32)
    visual_feats = jax.random.normal(k_vf, (B, V, F), jnp.float32)
    visual_pos = jax.random.uniform(k_vp, (B, V, 4), jnp.float32)

    params = make_params(k_par, F=F)

    fwd = jax.jit(combined_lxmert_forward)
    combined_logits = fwd(input_ids, attention_mask, token_type_ids,
                          visual_feats, visual_pos, params)
    jax.block_until_ready(combined_logits)

    A = params["w2"].shape[-1]
    assert combined_logits.shape == (B, A)
    assert bool(jnp.all(jnp.isfinite(combined_logits)))

    ref = reference_forward(input_ids, attention_mask, token_type_ids,
                            visual_feats, visual_pos, params)
    assert jnp.allclose(combined_logits, ref, atol=2e-3, rtol=2e-2)

    print("KERNEL_OK")
</pallas_src>

<mosaic_0001>
module attributes {stable_mosaic.version = 11 : i64} {
  func.func @kernel(%arg0: i32, %arg1: memref<8x256xf32, #tpu.memory_space<vmem>>, %arg2: memref<128x128xbf16, #tpu.memory_space<vmem>>, %arg3: memref<128x128xbf16, #tpu.memory_space<vmem>>, %arg4: memref<128x256xbf16, #tpu.memory_space<vmem>>, %arg5: memref<128x128xf32, #tpu.memory_space<vmem>>, %arg6: memref<8x256xf32, #tpu.memory_space<vmem>>, %arg7: memref<8x128xf32, #tpu.memory_space<vmem>>) attributes {dimension_semantics = [#tpu.dimension_semantics<parallel>], iteration_bounds = array<i64: 1>, scalar_prefetch = 0 : i64, scratch_operands = 0 : i64, tpu.core_type = #tpu.core_type<tc>, window_params = [{transform_indices = @transform_0, window_bounds = array<i64: 8, 256>}, {pipeline_mode = #tpu.pipeline_mode<synchronous>, transform_indices = @transform_1, window_bounds = array<i64: 128, 128>}, {pipeline_mode = #tpu.pipeline_mode<synchronous>, transform_indices = @transform_2, window_bounds = array<i64: 128, 128>}, {pipeline_mode = #tpu.pipeline_mode<synchronous>, transform_indices = @transform_3, window_bounds = array<i64: 128, 256>}, {pipeline_mode = #tpu.pipeline_mode<synchronous>, transform_indices = @transform_4, window_bounds = array<i64: 128, 128>}, {pipeline_mode = #tpu.pipeline_mode<synchronous>, transform_indices = @transform_5, window_bounds = array<i64: 8, 256>}, {transform_indices = @transform_6, window_bounds = array<i64: 8, 128>}]} {
    %c0 = arith.constant 0 : index
    %c0_0 = arith.constant 0 : index
    %0 = vector.load %arg1[%c0, %c0_0] : memref<8x256xf32, #tpu.memory_space<vmem>>, vector<8x256xf32>
    %1 = vector.extract_strided_slice %0 {offsets = [0, 0], sizes = [8, 128], strides = [1, 1]} : vector<8x256xf32> to vector<8x128xf32>
    %2 = vector.extract_strided_slice %0 {offsets = [0, 128], sizes = [8, 128], strides = [1, 1]} : vector<8x256xf32> to vector<8x128xf32>
    %c0_1 = arith.constant 0 : index
    %c0_2 = arith.constant 0 : index
    %3 = vector.load %arg6[%c0_1, %c0_2] : memref<8x256xf32, #tpu.memory_space<vmem>>, vector<8x256xf32>
    %4 = vector.extract_strided_slice %3 {offsets = [0, 0], sizes = [1, 128], strides = [1, 1]} : vector<8x256xf32> to vector<1x128xf32>
    %5 = vector.extract_strided_slice %3 {offsets = [1, 0], sizes = [1, 128], strides = [1, 1]} : vector<8x256xf32> to vector<1x128xf32>
    %6 = vector.extract_strided_slice %3 {offsets = [2, 0], sizes = [1, 128], strides = [1, 1]} : vector<8x256xf32> to vector<1x128xf32>
    %7 = vector.extract_strided_slice %3 {offsets = [3, 0], sizes = [1, 128], strides = [1, 1]} : vector<8x256xf32> to vector<1x128xf32>
    %8 = vector.extract_strided_slice %3 {offsets = [4, 0], sizes = [1, 256], strides = [1, 1]} : vector<8x256xf32> to vector<1x256xf32>
    %9 = arith.truncf %1 : vector<8x128xf32> to vector<8x128xbf16>
    %c0_3 = arith.constant 0 : index
    %c0_4 = arith.constant 0 : index
    %10 = vector.load %arg2[%c0_3, %c0_4] : memref<128x128xbf16, #tpu.memory_space<vmem>>, vector<128x128xbf16>
    %cst = arith.constant dense<0.000000e+00> : vector<8x128xf32>
    %11 = tpu.matmul %9, %10, %cst {dimension_numbers = #tpu.dot_dimension_numbers<[1], [0], [0], [1], [0, 0, 1, 1], [], []>} : vector<8x128xbf16>, vector<128x128xbf16>, vector<8x128xf32> -> vector<8x128xf32>
    %12 = vector.broadcast %4 : vector<1x128xf32> to vector<8x128xf32>
    %13 = arith.addf %11, %12 : vector<8x128xf32>
    %14 = arith.mulf %13, %13 : vector<8x128xf32>
    %15 = arith.mulf %13, %14 : vector<8x128xf32>
    %cst_5 = arith.constant 4.471500e-02 : f32
    %16 = vector.broadcast %cst_5 : f32 to vector<8x128xf32>
    %17 = arith.mulf %16, %15 : vector<8x128xf32>
    %18 = arith.addf %13, %17 : vector<8x128xf32>
    %cst_6 = arith.constant 0.797884583 : f32
    %19 = vector.broadcast %cst_6 : f32 to vector<8x128xf32>
    %20 = arith.mulf %19, %18 : vector<8x128xf32>
    %21 = math.tanh %20 : vector<8x128xf32>
    %cst_7 = arith.constant 1.000000e+00 : f32
    %22 = vector.broadcast %cst_7 : f32 to vector<8x128xf32>
    %23 = arith.addf %22, %21 : vector<8x128xf32>
    %cst_8 = arith.constant 5.000000e-01 : f32
    %24 = vector.broadcast %cst_8 : f32 to vector<8x128xf32>
    %25 = arith.mulf %24, %23 : vector<8x128xf32>
    %26 = arith.mulf %13, %25 : vector<8x128xf32>
    %27 = arith.mulf %2, %26 : vector<8x128xf32>
    %28 = arith.truncf %27 : vector<8x128xf32> to vector<8x128xbf16>
    %c0_9 = arith.constant 0 : index
    %c0_10 = arith.constant 0 : index
    %29 = vector.load %arg3[%c0_9, %c0_10] : memref<128x128xbf16, #tpu.memory_space<vmem>>, vector<128x128xbf16>
    %cst_11 = arith.constant dense<0.000000e+00> : vector<8x128xf32>
    %30 = tpu.matmul %28, %29, %cst_11 {dimension_numbers = #tpu.dot_dimension_numbers<[1], [0], [0], [1], [0, 0, 1, 1], [], []>} : vector<8x128xbf16>, vector<128x128xbf16>, vector<8x128xf32> -> vector<8x128xf32>
    %31 = vector.broadcast %5 : vector<1x128xf32> to vector<8x128xf32>
    %32 = arith.addf %30, %31 : vector<8x128xf32>
    %33 = arith.mulf %32, %32 : vector<8x128xf32>
    %34 = arith.mulf %32, %33 : vector<8x128xf32>
    %cst_12 = arith.constant 4.471500e-02 : f32
    %35 = vector.broadcast %cst_12 : f32 to vector<8x128xf32>
    %36 = arith.mulf %35, %34 : vector<8x128xf32>
    %37 = arith.addf %32, %36 : vector<8x128xf32>
    %cst_13 = arith.constant 0.797884583 : f32
    %38 = vector.broadcast %cst_13 : f32 to vector<8x128xf32>
    %39 = arith.mulf %38, %37 : vector<8x128xf32>
    %40 = math.tanh %39 : vector<8x128xf32>
    %cst_14 = arith.constant 1.000000e+00 : f32
    %41 = vector.broadcast %cst_14 : f32 to vector<8x128xf32>
    %42 = arith.addf %41, %40 : vector<8x128xf32>
    %cst_15 = arith.constant 5.000000e-01 : f32
    %43 = vector.broadcast %cst_15 : f32 to vector<8x128xf32>
    %44 = arith.mulf %43, %42 : vector<8x128xf32>
    %45 = arith.mulf %32, %44 : vector<8x128xf32>
    %c0_16 = arith.constant 0 : index
    %c0_17 = arith.constant 0 : index
    %46 = vector.load %arg5[%c0_16, %c0_17] : memref<128x128xf32, #tpu.memory_space<vmem>>, vector<128x128xf32>
    %cst_18 = arith.constant dense<0.000000e+00> : vector<8x128xf32>
    %47 = tpu.matmul %45, %46, %cst_18 {dimension_numbers = #tpu.dot_dimension_numbers<[1], [0], [0], [1], [0, 0, 1, 1], [], []>} : vector<8x128xf32>, vector<128x128xf32>, vector<8x128xf32> -> vector<8x128xf32>
    %48 = arith.mulf %45, %45 : vector<8x128xf32>
    %cst_19 = arith.constant dense<0.000000e+00> : vector<8x128xf32>
    %49 = tpu.matmul %48, %46, %cst_19 {dimension_numbers = #tpu.dot_dimension_numbers<[1], [0], [0], [1], [0, 0, 1, 1], [], []>} : vector<8x128xf32>, vector<128x128xf32>, vector<8x128xf32> -> vector<8x128xf32>
    %50 = arith.mulf %47, %47 : vector<8x128xf32>
    %51 = arith.subf %49, %50 : vector<8x128xf32>
    %52 = arith.subf %45, %47 : vector<8x128xf32>
    %cst_20 = arith.constant 9.99999996E-13 : f32
    %53 = vector.broadcast %cst_20 : f32 to vector<8x128xf32>
    %54 = arith.addf %51, %53 : vector<8x128xf32>
    %55 = math.rsqrt %54 : vector<8x128xf32>
    %56 = arith.mulf %52, %55 : vector<8x128xf32>
    %57 = vector.broadcast %6 : vector<1x128xf32> to vector<8x128xf32>
    %58 = arith.mulf %56, %57 : vector<8x128xf32>
    %59 = vector.broadcast %7 : vector<1x128xf32> to vector<8x128xf32>
    %60 = arith.addf %58, %59 : vector<8x128xf32>
    %61 = arith.truncf %60 : vector<8x128xf32> to vector<8x128xbf16>
    %c0_21 = arith.constant 0 : index
    %c0_22 = arith.constant 0 : index
    %62 = vector.load %arg4[%c0_21, %c0_22] : memref<128x256xbf16, #tpu.memory_space<vmem>>, vector<128x256xbf16>
    %cst_23 = arith.constant dense<0.000000e+00> : vector<8x256xf32>
    %63 = tpu.matmul %61, %62, %cst_23 {dimension_numbers = #tpu.dot_dimension_numbers<[1], [0], [0], [1], [0, 0, 1, 1], [], []>} : vector<8x128xbf16>, vector<128x256xbf16>, vector<8x256xf32> -> vector<8x256xf32>
    %64 = vector.broadcast %8 : vector<1x256xf32> to vector<8x256xf32>
    %65 = arith.addf %63, %64 : vector<8x256xf32>
    %66 = vector.extract_strided_slice %65 {offsets = [0, 0], sizes = [8, 128], strides = [1, 1]} : vector<8x256xf32> to vector<8x128xf32>
    %67 = vector.extract_strided_slice %65 {offsets = [0, 128], sizes = [8, 128], strides = [1, 1]} : vector<8x256xf32> to vector<8x128xf32>
    %cst_24 = arith.constant dense<0xFF800000> : vector<8xf32>
    %68 = vector.multi_reduction <maximumf>, %66, %cst_24 [1] : vector<8x128xf32> to vector<8xf32>
    %69 = vector.shape_cast %68 : vector<8xf32> to vector<8x1xf32>
    %70 = vector.broadcast %69 : vector<8x1xf32> to vector<8x128xf32>
    %71 = arith.subf %66, %70 : vector<8x128xf32>
    %72 = math.exp %71 : vector<8x128xf32>
    %cst_25 = arith.constant dense<0.000000e+00> : vector<8xf32>
    %73 = vector.multi_reduction <add>, %72, %cst_25 [1] : vector<8x128xf32> to vector<8xf32>
    %74 = vector.shape_cast %73 : vector<8xf32> to vector<8x1xf32>
    %cst_26 = arith.constant dense<0xFF800000> : vector<8xf32>
    %75 = vector.multi_reduction <maximumf>, %67, %cst_26 [1] : vector<8x128xf32> to vector<8xf32>
    %76 = vector.shape_cast %75 : vector<8xf32> to vector<8x1xf32>
    %77 = vector.broadcast %76 : vector<8x1xf32> to vector<8x128xf32>
    %78 = arith.subf %67, %77 : vector<8x128xf32>
    %79 = math.exp %78 : vector<8x128xf32>
    %cst_27 = arith.constant dense<0.000000e+00> : vector<8xf32>
    %80 = vector.multi_reduction <add>, %79, %cst_27 [1] : vector<8x128xf32> to vector<8xf32>
    %81 = vector.shape_cast %80 : vector<8xf32> to vector<8x1xf32>
    %82 = arith.cmpf olt, %74, %81 : vector<8x1xf32>
    %83 = vector.shape_cast %82 : vector<8x1xi1> to vector<8x1xi1>
    %84 = vector.broadcast %83 : vector<8x1xi1> to vector<8x128xi1>
    %85 = arith.select %84, %66, %67 : vector<8x128xi1>, vector<8x128xf32>
    %c0_28 = arith.constant 0 : index
    %c0_29 = arith.constant 0 : index
    %86 = vector.load %arg7[%c0_28, %c0_29] : memref<8x128xf32, #tpu.memory_space<vmem>>, vector<8x128xf32>
    tpu.vector_store %arg7[%c0_28, %c0_29], %85 {strides = array<i32>} : memref<8x128xf32, #tpu.memory_space<vmem>>, vector<8x128xf32>,
    return
  }
  func.func @transform_0(%arg0: i32) -> (i32, i32) {
    %c0_i32 = arith.constant 0 : i32
    %c0_i32_0 = arith.constant 0 : i32
    return %arg0, %c0_i32 : i32, i32
  }
  func.func @transform_1(%arg0: i32) -> (i32, i32) {
    %c0_i32 = arith.constant 0 : i32
    %c0_i32_0 = arith.constant 0 : i32
    %c0_i32_1 = arith.constant 0 : i32
    return %c0_i32, %c0_i32_0 : i32, i32
  }
  func.func @transform_2(%arg0: i32) -> (i32, i32) {
    %c0_i32 = arith.constant 0 : i32
    %c0_i32_0 = arith.constant 0 : i32
    %c0_i32_1 = arith.constant 0 : i32
    return %c0_i32, %c0_i32_0 : i32, i32
  }
  func.func @transform_3(%arg0: i32) -> (i32, i32) {
    %c0_i32 = arith.constant 0 : i32
    %c0_i32_0 = arith.constant 0 : i32
    %c0_i32_1 = arith.constant 0 : i32
    return %c0_i32, %c0_i32_0 : i32, i32
  }
  func.func @transform_4(%arg0: i32) -> (i32, i32) {
    %c0_i32 = arith.constant 0 : i32
    %c0_i32_0 = arith.constant 0 : i32
    %c0_i32_1 = arith.constant 0 : i32
    return %c0_i32, %c0_i32_0 : i32, i32
  }
  func.func @transform_5(%arg0: i32) -> (i32, i32) {
    %c0_i32 = arith.constant 0 : i32
    %c0_i32_0 = arith.constant 0 : i32
    %c0_i32_1 = arith.constant 0 : i32
    return %c0_i32, %c0_i32_0 : i32, i32
  }
  func.func @transform_6(%arg0: i32) -> (i32, i32) {
    %c0_i32 = arith.constant 0 : i32
    %c0_i32_0 = arith.constant 0 : i32
    return %arg0, %c0_i32 : i32, i32
  }
}

</mosaic_0001>

<bundles_post_ra>
// kernel: combined_lxmert_forward.1
= control target key start
LH: loop header
LB: loop body
LE: loop exit
PB: predicated region body
PF: predicated region fallthrough
CT: control target
= control target key end

     0   :  { %v854_v0 = vmov 0.0   ;;  %vm855_vm0 = vmmov 0   ;;  %v45_v19 = vlaneseq  ;;  %s1121_s1 = inlined_call_operand.vmem [shape: bf16[128,128], index: 1, kind: input, shape index: {}]   ;;  %s1122_s0 = inlined_call_operand.vmem [shape: f32[8,256], index: 0, kind: input, shape index: {}]   ;;  %s1123_s2 = inlined_call_operand.vmem [shape: bf16[128,128], index: 2, kind: input, shape index: {}]   ;;  %s1124_s5 = inlined_call_operand.vmem [shape: f32[8,256], index: 5, kind: input, shape index: {}]   ;;  %s1125_s4 = inlined_call_operand.vmem [shape: f32[128,128], index: 4, kind: input, shape index: {}]   ;;  %s1126_s3 = inlined_call_operand.vmem [shape: bf16[128,256], index: 3, kind: input, shape index: {}]   ;;  %s1127_s6 = inlined_call_operand.vmem [shape: f32[8,128], index: 6, kind: output, shape index: {}]  }
   0x1   :  { %691 = vmatprep.subr.bf16.mxu1 %v854_v0  ;;  %v804_v1 = vld [vmem:[%s1121_s1 + $0x38] sm:$0xff]   ;;  %707 = vmatprep.mubr.msk.bf16.mxu1 %vm855_vm0, %v854_v0  ;;  %v805_v2 = vld [vmem:[%s1121_s1 + $0x30] sm:$0xff]   ;;  %v806_v3 = vld [vmem:[%s1121_s1 + $0x28] sm:$0xff]  }
   0x2   :  { %731 = vmatprep.subr.mxu0 %v854_v0  ;;  %763 = vmatprep.mubr.msk.f32.mxu0 %vm855_vm0, %v854_v0  ;;  %v807_v4 = vld [vmem:[%s1121_s1 + $0x20] sm:$0xff]   ;;  %v808_v5 = vld [vmem:[%s1121_s1 + $0x18] sm:$0xff]   ;;  %v809_v6 = vld [vmem:[%s1121_s1 + $0x10] sm:$0xff]   ;;  %v967_v20 = vshrl.u32 %v45_v19, 7 }
   0x3   :  { %692 = vmatpush3.bf16.msra.mxu1 %v804_v1  ;;  %v810_v7 = vld [vmem:[%s1121_s1 + $0x8] sm:$0xff]   ;;  %v811_v8 = vld [vmem:[%s1121_s1] sm:$0xff]   ;;  %v812_v11 = vld [vmem:[%s1123_s2 + $0x38] sm:$0xff]  }
   0x4   :  { %693 = vmatprep.subr.bf16.mxu1 %v854_v0  ;;  %v24_v9 = vld [vmem:[%s1122_s0] sm:$0xff]  ;;  %v813_v12 = vld [vmem:[%s1123_s2 + $0x30] sm:$0xff]   ;;  %v814_v13 = vld [vmem:[%s1123_s2 + $0x28] sm:$0xff]   ;;  %v47_v21 = vsub.s32 0, %v967_v20  ;;  %v166_v58 = vsub.s32 1, %v967_v20 }
   0x5   :  { %v28_v10 = vpack.c.bf16 %v24_v9, %v24_v9  ;;  %v815_v14 = vld [vmem:[%s1123_s2 + $0x20] sm:$0xff]   ;;  %v816_v15 = vld [vmem:[%s1123_s2 + $0x18] sm:$0xff]   ;;  %v817_v16 = vld [vmem:[%s1123_s2 + $0x10] sm:$0xff]  }
   0x6   :  { %v818_v17 = vld [vmem:[%s1123_s2 + $0x8] sm:$0xff]   ;;  %v819_v18 = vld [vmem:[%s1123_s2] sm:$0xff]   ;;  %v280_v41 = vld [vmem:[%s1125_s4 + $0x78] sm:$0xff] }
   0x7   :  { %694 = vmatpush3.bf16.msra.mxu1 %v805_v2  ;;  %v973_v22 = vld [vmem:[%s1124_s5] sm:$0xff]  ;;  %v25_v37 = vld [vmem:[%s1122_s0 + $0x8] sm:$0xff]  ;;  %732 = vmatpush3.msra.mxu0 %v280_v41  ;;  %v279_v42 = vld [vmem:[%s1125_s4 + $0x70] sm:$0xff] }
   0x8   :  { %695 = vmatprep.subr.bf16.mxu1 %v854_v0  ;;  %v48_v23 = vrot.slane %v973_v22, %v47_v21  ;;  %733 = vmatprep.subr.mxu0 %v854_v0  ;;  %v278_v43 = vld [vmem:[%s1125_s4 + $0x68] sm:$0xff]  ;;  %v277_v44 = vld [vmem:[%s1125_s4 + $0x60] sm:$0xff]  ;;  %v276_v45 = vld [vmem:[%s1125_s4 + $0x58] sm:$0xff]  ;;  %v167_v59 = vrot.slane %v973_v22, %v166_v58 }
   0x9   :  { %734 = vmatpush3.msra.mxu0 %v279_v42  ;;  %v275_v46 = vld [vmem:[%s1125_s4 + $0x50] sm:$0xff]  ;;  %v274_v47 = vld [vmem:[%s1125_s4 + $0x48] sm:$0xff]  ;;  %v273_v48 = vld [vmem:[%s1125_s4 + $0x40] sm:$0xff] }
   0xa   :  { %735 = vmatprep.subr.mxu0 %v854_v0  ;;  %v272_v49 = vld [vmem:[%s1125_s4 + $0x38] sm:$0xff]  ;;  %v271_v50 = vld [vmem:[%s1125_s4 + $0x30] sm:$0xff]  ;;  %v270_v51 = vld [vmem:[%s1125_s4 + $0x28] sm:$0xff] }
   0xb   :  { %696 = vmatpush3.bf16.msra.mxu1 %v806_v3  ;;  %736 = vmatpush3.msra.mxu0 %v278_v43  ;;  %v269_v52 = vld [vmem:[%s1125_s4 + $0x20] sm:$0xff]  ;;  %v268_v53 = vld [vmem:[%s1125_s4 + $0x18] sm:$0xff]  ;;  %v267_v54 = vld [vmem:[%s1125_s4 + $0x10] sm:$0xff] }
   0xc   :  { %697 = vmatprep.subr.bf16.mxu1 %v854_v0  ;;  %737 = vmatprep.subr.mxu0 %v854_v0  ;;  %v266_v55 = vld [vmem:[%s1125_s4 + $0x8] sm:$0xff]  ;;  %v265_v56 = vld [vmem:[%s1125_s4] sm:$0xff]  ;;  %v822_v57 = vld [vmem:[%s1126_s3 + $0x74] ss:$8 sps:$4 sm:$0xff]  }
   0xd   :  { %738 = vmatpush3.msra.mxu0 %v277_v44  ;;  %v820_v9 = vld [vmem:[%s1126_s3 + $0x70] ss:$8 sps:$4 sm:$0xff]   ;;  %v837_v21 = vld [vmem:[%s1126_s3 + $0x24] ss:$8 sps:$4 sm:$0xff]  }
   0xe   :  { %739 = vmatprep.subr.mxu0 %v854_v0  ;;  %v832_v19 = vld [vmem:[%s1126_s3 + $0x30] ss:$8 sps:$4 sm:$0xff]  }
   0xf   :  { %698 = vmatpush3.bf16.msra.mxu1 %v807_v4  ;;  %740 = vmatpush3.msra.mxu0 %v276_v45 }
  0x10   :  { %699 = vmatprep.subr.bf16.mxu1 %v854_v0  ;;  %741 = vmatprep.subr.mxu0 %v854_v0 }
  0x11   :  { %742 = vmatpush3.msra.mxu0 %v275_v46 }
  0x12   :  { %743 = vmatprep.subr.mxu0 %v854_v0 }
  0x13   :  { %700 = vmatpush3.bf16.msra.mxu1 %v808_v5  ;;  %744 = vmatpush3.msra.mxu0 %v274_v47 }
  0x14   :  { %701 = vmatprep.subr.bf16.mxu1 %v854_v0  ;;  %745 = vmatprep.subr.mxu0 %v854_v0 }
  0x15   :  { %746 = vmatpush3.msra.mxu0 %v273_v48 }
  0x16   :  { %747 = vmatprep.subr.mxu0 %v854_v0 }
  0x17   :  { %702 = vmatpush3.bf16.msra.mxu1 %v809_v6  ;;  %748 = vmatpush3.msra.mxu0 %v272_v49 }
  0x18   :  { %703 = vmatprep.subr.bf16.mxu1 %v854_v0  ;;  %749 = vmatprep.subr.mxu0 %v854_v0 }
  0x19   :  { %750 = vmatpush3.msra.mxu0 %v271_v50 }
  0x1a   :  { %751 = vmatprep.subr.mxu0 %v854_v0 }
  0x1b   :  { %704 = vmatpush3.bf16.msra.mxu1 %v810_v7  ;;  %752 = vmatpush3.msra.mxu0 %v270_v51 }
  0x1c   :  { %705 = vmatprep.subr.bf16.mxu1 %v854_v0  ;;  %753 = vmatprep.subr.mxu0 %v854_v0 }
  0x1d   :  { %754 = vmatpush3.msra.mxu0 %v269_v52 }
  0x1e   :  { %755 = vmatprep.subr.mxu0 %v854_v0 }
  0x1f   :  { %706 = vmatpush3.bf16.msra.mxu1 %v811_v8  ;;  %756 = vmatpush3.msra.mxu0 %v268_v53 }
  0x20   :  { %711 = vmatprep.subr.bf16.mxu1 %v854_v0  ;;  %757 = vmatprep.subr.mxu0 %v854_v0 }
  0x21   :  { %758 = vmatpush3.msra.mxu0 %v267_v54 }
  0x22   :  { %708 = vmatmul.mubr.bf16.vlgmr.msra.gmra.mxu1 %v28_v10  ;;  %759 = vmatprep.subr.mxu0 %v854_v0 }
  0x23   :  { %727 = vmatprep.mubr.msk.bf16.mxu1 %vm855_vm0, %v854_v0  ;;  %712 = vmatpush3.bf16.msra.mxu1 %v812_v11 }
  0x24   :  { %713 = vmatprep.subr.bf16.mxu1 %v854_v0  ;;  %760 = vmatpush3.msra.mxu0 %v266_v55 }
  0x25   :  { %761 = vmatprep.subr.mxu0 %v854_v0 }
  0x26   :  { %762 = vmatpush3.msra.mxu0 %v265_v56 }
  0x27   :  { %714 = vmatpush3.bf16.msra.mxu1 %v813_v12  ;;  %543 = vmatprep.subr.bf16.mxu0 %v822_v57  ;;  %v825_v12 = vld [vmem:[%s1126_s3 + $0x64] ss:$8 sps:$4 sm:$0xff]  }
  0x28   :  { %715 = vmatprep.subr.bf16.mxu1 %v854_v0 }
  0x2b   :  { %716 = vmatpush3.bf16.msra.mxu1 %v814_v13  ;;  %v823_v13 = vld [vmem:[%s1126_s3 + $0x60] ss:$8 sps:$4 sm:$0xff]  }
  0x2c   :  { %717 = vmatprep.subr.bf16.mxu1 %v854_v0 }
  0x2f   :  { %718 = vmatpush3.bf16.msra.mxu1 %v815_v14  ;;  %v828_v14 = vld [vmem:[%s1126_s3 + $0x54] ss:$8 sps:$4 sm:$0xff]  }
  0x30   :  { %719 = vmatprep.subr.bf16.mxu1 %v854_v0 }
  0x33   :  { %720 = vmatpush3.bf16.msra.mxu1 %v816_v15  ;;  %v826_v15 = vld [vmem:[%s1126_s3 + $0x50] ss:$8 sps:$4 sm:$0xff]  }
  0x34   :  { %721 = vmatprep.subr.bf16.mxu1 %v854_v0 }
  0x37   :  { %722 = vmatpush3.bf16.msra.mxu1 %v817_v16  ;;  %v829_v16 = vld [vmem:[%s1126_s3 + $0x40] ss:$8 sps:$4 sm:$0xff]  }
  0x38   :  { %723 = vmatprep.subr.bf16.mxu1 %v854_v0 }
  0x3b   :  { %724 = vmatpush3.bf16.msra.mxu1 %v818_v17  ;;  %v831_v17 = vld [vmem:[%s1126_s3 + $0x44] ss:$8 sps:$4 sm:$0xff]  }
  0x3c   :  { %725 = vmatprep.subr.bf16.mxu1 %v854_v0 }
  0x3f   :  { %726 = vmatpush3.bf16.msra.mxu1 %v819_v18  ;;  %v834_v18 = vld [vmem:[%s1126_s3 + $0x34] ss:$8 sps:$4 sm:$0xff]  }
  0x40   :  { %766 = vmatprep.subr.mxu1 %v854_v0 }
  0xe2   :  { %v131_v24 = vpop.f32.mrf.mxu1 }
  0xe3   :  { %v132_v25 = vadd.f32 %v131_v24, %v48_v23  ;;  %v856_v23 = vmov 0   ;;  %v835_v24 = vld [vmem:[%s1126_s3 + $0x20] ss:$8 sps:$4 sm:$0xff]  }
  0xe4   :  { %v709_v26 = vpop.f32.mrf.mxu1 }
  0xe5   :  { %v137_v27 = vmul.f32 %v132_v25, %v132_v25  ;;  %v838_v26 = vld [vmem:[%s1126_s3 + $0x10] ss:$8 sps:$4 sm:$0xff]  }
  0xe6   :  { %v134_v28 = vpop.f32.mrf.mxu1 }
  0xe7   :  { %v138_v29 = vmul.f32 %v137_v27, %v132_v25  ;;  %v843_v27 = vld [vmem:[%s1126_s3 + $0x4] ss:$8 sps:$4 sm:$0xff]   ;;  %v841_v28 = vld [vmem:[%s1126_s3] ss:$8 sps:$4 sm:$0xff]  }
  0xe8   :  { %v710_v30 = vpop.f32.mrf.mxu1 }
  0xe9   :  { %v139_v31 = vmul.f32 0.044715, %v138_v29 }
  0xeb   :  { %v140_v32 = vadd.f32 %v139_v31, %v132_v25 }
  0xed   :  { %v141_v33 = vmul.f32 0.7978846, %v140_v32 }
  0xef   :  { %844 = vtanh.f32 %v141_v33 }
  0xfc   :  { %v845_v34 = vpop.eup %844 }
  0xfd   :  { %v143_v35 = vadd.f32 1.0, %v845_v34 }
  0xff   :  { %v144_v36 = vmul.f32 0.5, %v143_v35 }
 0x101   :  { %v145_v38 = vmul.f32 %v144_v36, %v132_v25  ;;  %v840_v25 = vld [vmem:[%s1126_s3 + $0x14] ss:$8 sps:$4 sm:$0xff]   ;;  %v430_v36 = vsub.s32 2, %v967_v20 }
 0x103   :  { %v146_v39 = vmul.f32 %v145_v38, %v25_v37  ;;  %v435_v37 = vsub.s32 3, %v967_v20 }
 0x105   :  { %v147_v40 = vpack.c.bf16 %v146_v39, %v146_v39  ;;  %v431_v39 = vrot.slane %v973_v22, %v430_v36 }
 0x107   :  { %728 = vmatmul.mubr.bf16.vlgmr.msra.gmra.mxu1 %v147_v40 }
 0x108   :  { %798 = vmatprep.mubr.msk.f32.mxu1 %vm855_vm0, %v854_v0  ;;  %767 = vmatpush3.msra.mxu1 %v280_v41 }
 0x109   :  { %768 = vmatprep.subr.mxu1 %v854_v0 }
 0x10a   :  { %769 = vmatpush3.msra.mxu1 %v279_v42  ;;  %v436_v42 = vrot.slane %v973_v22, %v435_v37 }
 0x10b   :  { %770 = vmatprep.subr.mxu1 %v854_v0 }
 0x10c   :  { %771 = vmatpush3.msra.mxu1 %v278_v43 }
 0x10d   :  { %772 = vmatprep.subr.mxu1 %v854_v0 }
 0x10e   :  { %773 = vmatpush3.msra.mxu1 %v277_v44 }
 0x10f   :  { %774 = vmatprep.subr.mxu1 %v854_v0 }
 0x110   :  { %775 = vmatpush3.msra.mxu1 %v276_v45 }
 0x111   :  { %776 = vmatprep.subr.mxu1 %v854_v0 }
 0x112   :  { %777 = vmatpush3.msra.mxu1 %v275_v46  ;;  %v457_v46 = vsub.s32 4, %v967_v20 }
 0x113   :  { %778 = vmatprep.subr.mxu1 %v854_v0 }
 0x114   :  { %779 = vmatpush3.msra.mxu1 %v274_v47  ;;  %v458_v47 = vrot.slane %v973_v22, %v457_v46 }
 0x115   :  { %780 = vmatprep.subr.mxu1 %v854_v0 }
 0x116   :  { %781 = vmatpush3.msra.mxu1 %v273_v48  ;;  %v27_v48 = vld [vmem:[%s1124_s5 + $0x8] sm:$0xff] }
 0x117   :  { %782 = vmatprep.subr.mxu1 %v854_v0 }
 0x118   :  { %783 = vmatpush3.msra.mxu1 %v272_v49 }
 0x119   :  { %784 = vmatprep.subr.mxu1 %v854_v0 }
 0x11a   :  { %785 = vmatpush3.msra.mxu1 %v271_v50 }
 0x11b   :  { %786 = vmatprep.subr.mxu1 %v854_v0 }
 0x11c   :  { %787 = vmatpush3.msra.mxu1 %v270_v51  ;;  %v462_v51 = vrot.slane %v27_v48, %v457_v46 }
 0x11d   :  { %788 = vmatprep.subr.mxu1 %v854_v0 }
 0x11e   :  { %789 = vmatpush3.msra.mxu1 %v269_v52 }
 0x11f   :  { %790 = vmatprep.subr.mxu1 %v854_v0 }
 0x120   :  { %791 = vmatpush3.msra.mxu1 %v268_v53 }
 0x121   :  { %792 = vmatprep.subr.mxu1 %v854_v0 }
 0x122   :  { %793 = vmatpush3.msra.mxu1 %v267_v54 }
 0x123   :  { %794 = vmatprep.subr.mxu1 %v854_v0 }
 0x124   :  { %795 = vmatpush3.msra.mxu1 %v266_v55 }
 0x125   :  { %796 = vmatprep.subr.mxu1 %v854_v0 }
 0x126   :  { %797 = vmatpush3.msra.mxu1 %v265_v56 }
 0x1c7   :  { %v250_v60 = vpop.f32.mrf.mxu1 }
 0x1c8   :  { %v251_v61 = vadd.f32 %v250_v60, %v167_v59 }
 0x1c9   :  { %v729_v62 = vpop.f32.mrf.mxu1 }
 0x1ca   :  { %v256_v63 = vmul.f32 %v251_v61, %v251_v61 }
 0x1cb   :  { %v253_v1 = vpop.f32.mrf.mxu1 }
 0x1cc   :  { %v257_v2 = vmul.f32 %v256_v63, %v251_v61 }
 0x1cd   :  { %v730_v3 = vpop.f32.mrf.mxu1 }
 0x1ce   :  { %v258_v4 = vmul.f32 0.044715, %v257_v2 }
 0x1d0   :  { %v259_v0 = vadd.f32 %v258_v4, %v251_v61 }
 0x1d2   :  { %v260_v5 = vmul.f32 0.7978846, %v259_v0 }
 0x1d4   :  { %846 = vtanh.f32 %v260_v5 }
 0x1e1   :  { %v847_v6 = vpop.eup %846 }
 0x1e2   :  { %v262_v7 = vadd.f32 1.0, %v847_v6 }
 0x1e4   :  { %v263_v8 = vmul.f32 0.5, %v262_v7 }
 0x1e6   :  { %v264_v10 = vmul.f32 %v263_v8, %v251_v61 }
 0x1e8   :  { %764 = vmatmul.mubr.f32.vlgmr.msra.gmra.mxu0 %v264_v10  ;;  %v351_v11 = vmul.f32 %v264_v10, %v264_v10 }
 0x1e9   :  { %544 = vmatpush1.bf16.msra.mxu0 %v820_v9  ;;  %575 = vmatprep.mubr.bf16.mxu0 %v856_v23 }
 0x1ea   :  { %799 = vmatmul.mubr.f32.vlgmr.msra.gmra.mxu1 %v351_v11  ;;  %545 = vmatprep.subr.bf16.mxu0 %v825_v12 }
 0x1ed   :  { %546 = vmatpush1.bf16.msra.mxu0 %v823_v13 }
 0x1ee   :  { %547 = vmatprep.subr.bf16.mxu0 %v828_v14 }
 0x1f1   :  { %548 = vmatpush1.bf16.msra.mxu0 %v826_v15 }
 0x1f2   :  { %549 = vmatprep.subr.bf16.mxu0 %v831_v17 }
 0x1f5   :  { %550 = vmatpush1.bf16.msra.mxu0 %v829_v16 }
 0x1f6   :  { %551 = vmatprep.subr.bf16.mxu0 %v834_v18 }
 0x1f9   :  { %552 = vmatpush1.bf16.msra.mxu0 %v832_v19 }
 0x1fa   :  { %553 = vmatprep.subr.bf16.mxu0 %v837_v21 }
 0x1fd   :  { %554 = vmatpush1.bf16.msra.mxu0 %v835_v24 }
 0x1fe   :  { %555 = vmatprep.subr.bf16.mxu0 %v840_v25 }
 0x201   :  { %556 = vmatpush1.bf16.msra.mxu0 %v838_v26 }
 0x202   :  { %557 = vmatprep.subr.bf16.mxu0 %v843_v27 }
 0x205   :  { %558 = vmatpush1.bf16.msra.mxu0 %v841_v28 }
 0x2a8   :  { %v347_v29 = vpop.f32.mrf.mxu0 }
 0x2a9   :  { %v422_v30 = vmul.f32 %v347_v29, %v347_v29  ;;  %v424_v38 = vsub.f32 %v264_v10, %v347_v29 }
 0x2aa   :  { %v765_v31 = vpop.f32.mrf.mxu0  ;;  %v418_v32 = vpop.f32.mrf.mxu1 }
 0x2ab   :  { %v423_v33 = vsub.f32 %v418_v32, %v422_v30 }
 0x2ac   :  { %v800_v34 = vpop.f32.mrf.mxu1 }
 0x2ad   :  { %v425_v35 = vadd.f32 1e-12, %v423_v33 }
 0x2af   :  { %848 = vrsqrt.f32 %v425_v35 }
 0x2bc   :  { %v849_v40 = vpop.eup %848 }
 0x2bd   :  { %v427_v41 = vmul.f32 %v849_v40, %v424_v38 }
 0x2bf   :  { %v432_v43 = vmul.f32 %v431_v39, %v427_v41 }
 0x2c1   :  { %v437_v44 = vadd.f32 %v436_v42, %v432_v43 }
 0x2c3   :  { %v438_v45 = vpack.c.bf16 %v437_v44, %v437_v44 }
 0x2c5   :  { %576 = vmatmul.mubr.bf16.vlgmr.msra.gmra.mxu0 %v438_v45 }
 0x385   :  { %v577_v49 = vpop.f32.mrf.mxu0 }
 0x386   :  { %v578_v50 = vadd.f32 %v577_v49, %v458_v47 }
 0x387   :  { %v579_v52 = vpop.f32.mrf.mxu0 }
 0x388   :  { %584 = vmax.xlane.f32.xlu0 %v578_v50  ;;  %v580_v54 = vadd.f32 %v579_v52, %v462_v51 }
 0x389   :  { %v581_v53 = vpop.f32.mrf.mxu0 }
 0x38b   :  { %v582_v55 = vpop.f32.mrf.mxu0 }
 0x38c   :  { %591 = vmax.xlane.f32.xlu0 %v580_v54 }
 0x411   :  { %v585_v56 = vpop.xlane.xlu0 %584 }
 0x412   :  { %v586_v57 = vsub.f32 %v578_v50, %v585_v56 }
 0x414   :  { %v587_v58 = vmul.f32 1.442695, %v586_v57 }
 0x415   :  { %v592_v59 = vpop.xlane.xlu0 %591 }
 0x416   :  { %850 = vpow2.f32 %v587_v58  ;;  %v593_v20 = vsub.f32 %v580_v54, %v592_v59 }
 0x418   :  { %v594_v22 = vmul.f32 1.442695, %v593_v20 }
 0x41a   :  { %852 = vpow2.f32 %v594_v22 }
 0x423   :  { %v851_v60 = vpop.eup %850 }
 0x424   :  { %589 = vadd.xlane.f32.xlu1 %v851_v60 }
 0x427   :  { %v853_v61 = vpop.eup %852 }
 0x428   :  { %596 = vadd.xlane.f32.xlu1 %v853_v61 }
 0x4ad   :  { %v590_v62 = vpop.xlane.xlu1 %589 }
 0x4b1   :  { %v597_v63 = vpop.xlane.xlu1 %596 }
 0x4b2   :  { %vm598_vm1 = vcmp.lt.f32.partialorder %v590_v62, %v597_v63 }
 0x4b3   :  { %v601_v1 = vsel %vm598_vm1, %v578_v50, %v580_v54 }
 0x4b4   :  { %602 = vst [vmem:[%s1127_s6] sm:$0xff] %v601_v1 }

</bundles_post_ra>
